<compile_context>
chip_gen: v5e
topology: v5e:2x2
jax: 0.10.0
libtpu: 0.0.40
codegen_flags: <defaults>
</compile_context>

<pallas_src>
import functools

import jax
import jax.numpy as jnp
from jax.experimental import pallas as pl
from jax.experimental.pallas import tpu as pltpu


SUBLANE = 8
HEAD_PAD = 8       # 5 heads padded to 8 lanes (last dim == full array dim is legal)
TILE_B_MAX = 1024  # batch tile; ~2-3 MB/step, safe within every generation's VMEM


def _round_up(n, m):
    return (n + m - 1) // m * m


def _mlp_kernel(x_ref,
                w1_ref, b1_ref,
                w2_ref, b2_ref,
                w3_ref, b3_ref,
                wh_ref, bh_ref,
                out_ref):
    """Fused forward for one batch tile:
       relu(x@W1+b1) -> relu(.@W2'+b2') -> relu(.@W3'+b3') -> .@Wh'+bh'
    (BN affines and downstream biases already folded into W2'/W3'/Wh'/b*')."""
    cdt = w1_ref.dtype  # bf16 compute dtype for the MXU; accumulation is f32

    # Cast the f32 x tile to bf16 in-kernel (no separate wrapper-side XLA pass).
    h = jnp.dot(x_ref[...].astype(cdt), w1_ref[...],
                preferred_element_type=jnp.float32)
    h = jnp.maximum(h + b1_ref[...], 0.0)

    h = jnp.dot(h.astype(cdt), w2_ref[...], preferred_element_type=jnp.float32)
    h = jnp.maximum(h + b2_ref[...], 0.0)

    h = jnp.dot(h.astype(cdt), w3_ref[...], preferred_element_type=jnp.float32)
    h = jnp.maximum(h + b3_ref[...], 0.0)

    out = jnp.dot(h.astype(cdt), wh_ref[...], preferred_element_type=jnp.float32)
    out_ref[...] = (out + bh_ref[...]).astype(out_ref.dtype)


@functools.partial(jax.jit, static_argnames=("output_dim",))
def portfolio_attribution_forward(x, folded_params, output_dim=5):
    (w1, b1, w2, b2, w3, b3, wh, bh) = folded_params
    B, D = x.shape

    # Batch tiling. No batch padding: grid covers B with a possibly-partial last
    # block; Pallas masks out-of-bounds writes on that block (rows are independent,
    # so garbage reads in the tail never affect valid rows).
    tile_b = min(TILE_B_MAX, _round_up(B, SUBLANE))
    grid = (pl.cdiv(B, tile_b),)

    def tile_map(i):
        return (i, 0)

    def resident_map(i):
        return (0, 0)

    in_specs = [
        pl.BlockSpec((tile_b, D), tile_map),   # x: streamed per tile, unpadded f32
        pl.BlockSpec(w1.shape, resident_map),  # weights/biases VMEM-resident
        pl.BlockSpec(b1.shape, resident_map),
        pl.BlockSpec(w2.shape, resident_map),
        pl.BlockSpec(b2.shape, resident_map),
        pl.BlockSpec(w3.shape, resident_map),
        pl.BlockSpec(b3.shape, resident_map),
        pl.BlockSpec(wh.shape, resident_map),
        pl.BlockSpec(bh.shape, resident_map),
    ]

    out = pl.pallas_call(
        _mlp_kernel,
        out_shape=jax.ShapeDtypeStruct((B, HEAD_PAD), jnp.float32),
        grid=grid,
        in_specs=in_specs,
        out_specs=pl.BlockSpec((tile_b, HEAD_PAD), tile_map),
        compiler_params=pltpu.CompilerParams(
            dimension_semantics=("parallel",),
        ),
    )(x, w1, b1, w2, b2, w3, b3, wh, bh)

    return out[:, :output_dim]


def init_params(key, input_dim, hidden_dims=(256, 128, 64), output_dim=5, eps=1e-5):
    """Raw (unfolded) parameters matching the PyTorch module, eval-mode BN."""
    params = []
    prev = input_dim
    for h in hidden_dims:
        key, kw, kb, kg, kbeta = jax.random.split(key, 5)
        bound = 1.0 / jnp.sqrt(prev)
        # Linear weight stored as (in, out) so forward is x @ W.
        w = jax.random.uniform(kw, (prev, h), jnp.float32, -bound, bound)
        b = jax.random.uniform(kb, (1, h), jnp.float32, -bound, bound)
        # BatchNorm1d (eval): gamma/beta learnable, running_mean=0, running_var=1.
        gamma = 1.0 + 0.1 * jax.random.normal(kg, (1, h), jnp.float32)
        beta = 0.1 * jax.random.normal(kbeta, (1, h), jnp.float32)
        running_mean = jnp.zeros((1, h), jnp.float32)
        running_var = jnp.ones((1, h), jnp.float32)
        scale = gamma / jnp.sqrt(running_var + eps)
        shift = beta - running_mean * scale
        params.extend([w, b, scale, shift])
        prev = h

    # Five Linear(prev, 1) heads fused into one (prev, 5) matrix / (1, 5) bias.
    key, kw, kb = jax.random.split(key, 3)
    bound = 1.0 / jnp.sqrt(prev)
    wh = jax.random.uniform(kw, (prev, output_dim), jnp.float32, -bound, bound)
    bh = jax.random.uniform(kb, (1, output_dim), jnp.float32, -bound, bound)
    params.extend([wh, bh])
    return tuple(params)


def fold_and_pad_params(raw_params, compute_dtype=jnp.bfloat16):
    """Host-side precompute: fold BN affines into the next layer, pad heads to 8
    lanes, cast weights to bf16."""
    (w1, b1, s1, t1, w2, b2, s2, t2, w3, b3, s3, t3, wh, bh) = raw_params

    # (h*s + t) @ W + b == h @ (s.T * W) + (t @ W + b)   -- exact f32 associativity.
    w2f = s1.T * w2
    b2f = t1 @ w2 + b2
    w3f = s2.T * w3
    b3f = t2 @ w3 + b3
    whf = s3.T * wh
    bhf = t3 @ wh + bh

    # Pad the fused heads (64, 5) -> (64, 8) / (1, 8); wrapper slices [:, :5].
    out_dim = whf.shape[1]
    whp = jnp.zeros((whf.shape[0], HEAD_PAD), whf.dtype).at[:, :out_dim].set(whf)
    bhp = jnp.zeros((1, HEAD_PAD), bhf.dtype).at[:, :out_dim].set(bhf)

    cdt = compute_dtype
    return (w1.astype(cdt), b1,
            w2f.astype(cdt), b2f,
            w3f.astype(cdt), b3f,
            whp.astype(cdt), bhp)


def reference_forward(x, raw_params):
    """Pure-JAX f32 reference with the original (unfolded) layer structure."""
    (w1, b1, s1, t1, w2, b2, s2, t2, w3, b3, s3, t3, wh, bh) = raw_params
    h = jnp.maximum(x @ w1 + b1, 0.0) * s1 + t1
    h = jnp.maximum(h @ w2 + b2, 0.0) * s2 + t2
    h = jnp.maximum(h @ w3 + b3, 0.0) * s3 + t3
    return h @ wh + bh


if __name__ == "__main__":
    key = jax.random.PRNGKey(0)
    k_x1, k_x2, k_p = jax.random.split(key, 3)

    INPUT_DIM = 32
    raw_params = init_params(k_p, INPUT_DIM)
    folded_params = fold_and_pad_params(raw_params)

    # Case 1: small batch, single full grid step.
    B1 = 8
    x1 = jax.random.normal(k_x1, (B1, INPUT_DIM), jnp.float32)
    out1 = jax.block_until_ready(portfolio_attribution_forward(x1, folded_params))
    ref1 = reference_forward(x1, raw_params)
    assert out1.shape == (B1, 5), out1.shape
    assert jnp.allclose(out1, ref1, atol=5e-2, rtol=5e-2), "mismatch vs JAX reference (B=8)"

    # Case 2: batch not a multiple of the tile (partial last block, masked writes).
    B2 = 500
    x2 = jax.random.normal(k_x2, (B2, INPUT_DIM), jnp.float32)
    out2 = jax.block_until_ready(portfolio_attribution_forward(x2, folded_params))
    ref2 = reference_forward(x2, raw_params)
    assert out2.shape == (B2, 5), out2.shape
    assert jnp.allclose(out2, ref2, atol=5e-2, rtol=5e-2), "mismatch vs JAX reference (B=500)"

    print("KERNEL_OK")
</pallas_src>

<mosaic_0001>
module attributes {stable_mosaic.version = 11 : i64} {
  func.func @_mlp_kernel(%arg0: i32, %arg1: memref<8x32xf32, #tpu.memory_space<vmem>>, %arg2: memref<32x256xbf16, #tpu.memory_space<vmem>>, %arg3: memref<1x256xf32, #tpu.memory_space<vmem>>, %arg4: memref<256x128xbf16, #tpu.memory_space<vmem>>, %arg5: memref<1x128xf32, #tpu.memory_space<vmem>>, %arg6: memref<128x64xbf16, #tpu.memory_space<vmem>>, %arg7: memref<1x64xf32, #tpu.memory_space<vmem>>, %arg8: memref<64x8xbf16, #tpu.memory_space<vmem>>, %arg9: memref<1x8xf32, #tpu.memory_space<vmem>>, %arg10: memref<8x8xf32, #tpu.memory_space<vmem>>) attributes {dimension_semantics = [#tpu.dimension_semantics<parallel>], iteration_bounds = array<i64: 1>, scalar_prefetch = 0 : i64, scratch_operands = 0 : i64, tpu.core_type = #tpu.core_type<tc>, window_params = [{transform_indices = @transform_0, window_bounds = array<i64: 8, 32>}, {pipeline_mode = #tpu.pipeline_mode<synchronous>, transform_indices = @transform_1, window_bounds = array<i64: 32, 256>}, {pipeline_mode = #tpu.pipeline_mode<synchronous>, transform_indices = @transform_2, window_bounds = array<i64: 1, 256>}, {pipeline_mode = #tpu.pipeline_mode<synchronous>, transform_indices = @transform_3, window_bounds = array<i64: 256, 128>}, {pipeline_mode = #tpu.pipeline_mode<synchronous>, transform_indices = @transform_4, window_bounds = array<i64: 1, 128>}, {pipeline_mode = #tpu.pipeline_mode<synchronous>, transform_indices = @transform_5, window_bounds = array<i64: 128, 64>}, {pipeline_mode = #tpu.pipeline_mode<synchronous>, transform_indices = @transform_6, window_bounds = array<i64: 1, 64>}, {pipeline_mode = #tpu.pipeline_mode<synchronous>, transform_indices = @transform_7, window_bounds = array<i64: 64, 8>}, {pipeline_mode = #tpu.pipeline_mode<synchronous>, transform_indices = @transform_8, window_bounds = array<i64: 1, 8>}, {transform_indices = @transform_9, window_bounds = array<i64: 8, 8>}]} {
    %c0 = arith.constant 0 : index
    %c0_0 = arith.constant 0 : index
    %0 = vector.load %arg1[%c0, %c0_0] : memref<8x32xf32, #tpu.memory_space<vmem>>, vector<8x32xf32>
    %1 = arith.truncf %0 : vector<8x32xf32> to vector<8x32xbf16>
    %c0_1 = arith.constant 0 : index
    %c0_2 = arith.constant 0 : index
    %2 = vector.load %arg2[%c0_1, %c0_2] : memref<32x256xbf16, #tpu.memory_space<vmem>>, vector<32x256xbf16>
    %cst = arith.constant dense<0.000000e+00> : vector<8x256xf32>
    %3 = tpu.matmul %1, %2, %cst {dimension_numbers = #tpu.dot_dimension_numbers<[1], [0], [0], [1], [0, 0, 1, 1], [], []>} : vector<8x32xbf16>, vector<32x256xbf16>, vector<8x256xf32> -> vector<8x256xf32>
    %c0_3 = arith.constant 0 : index
    %c0_4 = arith.constant 0 : index
    %4 = vector.load %arg3[%c0_3, %c0_4] : memref<1x256xf32, #tpu.memory_space<vmem>>, vector<1x256xf32>
    %5 = vector.broadcast %4 : vector<1x256xf32> to vector<8x256xf32>
    %6 = arith.addf %3, %5 : vector<8x256xf32>
    %cst_5 = arith.constant 0.000000e+00 : f32
    %7 = vector.broadcast %cst_5 : f32 to vector<8x256xf32>
    %8 = arith.maximumf %6, %7 : vector<8x256xf32>
    %9 = arith.truncf %8 : vector<8x256xf32> to vector<8x256xbf16>
    %c0_6 = arith.constant 0 : index
    %c0_7 = arith.constant 0 : index
    %10 = vector.load %arg4[%c0_6, %c0_7] : memref<256x128xbf16, #tpu.memory_space<vmem>>, vector<256x128xbf16>
    %cst_8 = arith.constant dense<0.000000e+00> : vector<8x128xf32>
    %11 = tpu.matmul %9, %10, %cst_8 {dimension_numbers = #tpu.dot_dimension_numbers<[1], [0], [0], [1], [0, 0, 1, 1], [], []>} : vector<8x256xbf16>, vector<256x128xbf16>, vector<8x128xf32> -> vector<8x128xf32>
    %c0_9 = arith.constant 0 : index
    %c0_10 = arith.constant 0 : index
    %12 = vector.load %arg5[%c0_9, %c0_10] : memref<1x128xf32, #tpu.memory_space<vmem>>, vector<1x128xf32>
    %13 = vector.broadcast %12 : vector<1x128xf32> to vector<8x128xf32>
    %14 = arith.addf %11, %13 : vector<8x128xf32>
    %cst_11 = arith.constant 0.000000e+00 : f32
    %15 = vector.broadcast %cst_11 : f32 to vector<8x128xf32>
    %16 = arith.maximumf %14, %15 : vector<8x128xf32>
    %17 = arith.truncf %16 : vector<8x128xf32> to vector<8x128xbf16>
    %c0_12 = arith.constant 0 : index
    %c0_13 = arith.constant 0 : index
    %18 = vector.load %arg6[%c0_12, %c0_13] : memref<128x64xbf16, #tpu.memory_space<vmem>>, vector<128x64xbf16>
    %cst_14 = arith.constant dense<0.000000e+00> : vector<8x64xf32>
    %19 = tpu.matmul %17, %18, %cst_14 {dimension_numbers = #tpu.dot_dimension_numbers<[1], [0], [0], [1], [0, 0, 1, 1], [], []>} : vector<8x128xbf16>, vector<128x64xbf16>, vector<8x64xf32> -> vector<8x64xf32>
    %c0_15 = arith.constant 0 : index
    %c0_16 = arith.constant 0 : index
    %20 = vector.load %arg7[%c0_15, %c0_16] : memref<1x64xf32, #tpu.memory_space<vmem>>, vector<1x64xf32>
    %21 = vector.broadcast %20 : vector<1x64xf32> to vector<8x64xf32>
    %22 = arith.addf %19, %21 : vector<8x64xf32>
    %cst_17 = arith.constant 0.000000e+00 : f32
    %23 = vector.broadcast %cst_17 : f32 to vector<8x64xf32>
    %24 = arith.maximumf %22, %23 : vector<8x64xf32>
    %25 = arith.truncf %24 : vector<8x64xf32> to vector<8x64xbf16>
    %c0_18 = arith.constant 0 : index
    %c0_19 = arith.constant 0 : index
    %26 = vector.load %arg8[%c0_18, %c0_19] : memref<64x8xbf16, #tpu.memory_space<vmem>>, vector<64x8xbf16>
    %cst_20 = arith.constant dense<0.000000e+00> : vector<8x8xf32>
    %27 = tpu.matmul %25, %26, %cst_20 {dimension_numbers = #tpu.dot_dimension_numbers<[1], [0], [0], [1], [0, 0, 1, 1], [], []>} : vector<8x64xbf16>, vector<64x8xbf16>, vector<8x8xf32> -> vector<8x8xf32>
    %c0_21 = arith.constant 0 : index
    %c0_22 = arith.constant 0 : index
    %28 = vector.load %arg9[%c0_21, %c0_22] : memref<1x8xf32, #tpu.memory_space<vmem>>, vector<1x8xf32>
    %29 = vector.broadcast %28 : vector<1x8xf32> to vector<8x8xf32>
    %30 = arith.addf %27, %29 : vector<8x8xf32>
    %c0_23 = arith.constant 0 : index
    %c0_24 = arith.constant 0 : index
    %31 = vector.load %arg10[%c0_23, %c0_24] : memref<8x8xf32, #tpu.memory_space<vmem>>, vector<8x8xf32>
    tpu.vector_store %arg10[%c0_23, %c0_24], %30 {strides = array<i32>} : memref<8x8xf32, #tpu.memory_space<vmem>>, vector<8x8xf32>,
    return
  }
  func.func @transform_0(%arg0: i32) -> (i32, i32) {
    %c0_i32 = arith.constant 0 : i32
    %c0_i32_0 = arith.constant 0 : i32
    return %arg0, %c0_i32 : i32, i32
  }
  func.func @transform_1(%arg0: i32) -> (i32, i32) {
    %c0_i32 = arith.constant 0 : i32
    %c0_i32_0 = arith.constant 0 : i32
    %c0_i32_1 = arith.constant 0 : i32
    return %c0_i32, %c0_i32_0 : i32, i32
  }
  func.func @transform_2(%arg0: i32) -> (i32, i32) {
    %c0_i32 = arith.constant 0 : i32
    %c0_i32_0 = arith.constant 0 : i32
    %c0_i32_1 = arith.constant 0 : i32
    return %c0_i32, %c0_i32_0 : i32, i32
  }
  func.func @transform_3(%arg0: i32) -> (i32, i32) {
    %c0_i32 = arith.constant 0 : i32
    %c0_i32_0 = arith.constant 0 : i32
    %c0_i32_1 = arith.constant 0 : i32
    return %c0_i32, %c0_i32_0 : i32, i32
  }
  func.func @transform_4(%arg0: i32) -> (i32, i32) {
    %c0_i32 = arith.constant 0 : i32
    %c0_i32_0 = arith.constant 0 : i32
    %c0_i32_1 = arith.constant 0 : i32
    return %c0_i32, %c0_i32_0 : i32, i32
  }
  func.func @transform_5(%arg0: i32) -> (i32, i32) {
    %c0_i32 = arith.constant 0 : i32
    %c0_i32_0 = arith.constant 0 : i32
    %c0_i32_1 = arith.constant 0 : i32
    return %c0_i32, %c0_i32_0 : i32, i32
  }
  func.func @transform_6(%arg0: i32) -> (i32, i32) {
    %c0_i32 = arith.constant 0 : i32
    %c0_i32_0 = arith.constant 0 : i32
    %c0_i32_1 = arith.constant 0 : i32
    return %c0_i32, %c0_i32_0 : i32, i32
  }
  func.func @transform_7(%arg0: i32) -> (i32, i32) {
    %c0_i32 = arith.constant 0 : i32
    %c0_i32_0 = arith.constant 0 : i32
    %c0_i32_1 = arith.constant 0 : i32
    return %c0_i32, %c0_i32_0 : i32, i32
  }
  func.func @transform_8(%arg0: i32) -> (i32, i32) {
    %c0_i32 = arith.constant 0 : i32
    %c0_i32_0 = arith.constant 0 : i32
    %c0_i32_1 = arith.constant 0 : i32
    return %c0_i32, %c0_i32_0 : i32, i32
  }
  func.func @transform_9(%arg0: i32) -> (i32, i32) {
    %c0_i32 = arith.constant 0 : i32
    %c0_i32_0 = arith.constant 0 : i32
    return %arg0, %c0_i32 : i32, i32
  }
}

</mosaic_0001>

<bundles_post_ra>
// kernel: portfolio_attribution_forward.1
= control target key start
LH: loop header
LB: loop body
LE: loop exit
PB: predicated region body
PF: predicated region fallthrough
CT: control target
= control target key end

     0   :  { %14 = vsyncpa [#allocation3], 0  ;;  %s788_s0 = inlined_call_operand.vmem [shape: f32[8,32], index: 0, kind: input, shape index: {}]   ;;  %s789_s1 = inlined_call_operand.vmem [shape: bf16[32,256], index: 1, kind: input, shape index: {}]   ;;  %s790_s2 = inlined_call_operand.vmem [shape: f32[1,256], index: 2, kind: input, shape index: {}]   ;;  %s791_s3 = inlined_call_operand.hbm [shape: bf16[256,128], index: 3, kind: input, shape index: {}]   ;;  %s792_s4 = inlined_call_operand.vmem [shape: f32[1,128], index: 4, kind: input, shape index: {}]   ;;  %s793_s5 = inlined_call_operand.vmem [shape: bf16[128,64], index: 5, kind: input, shape index: {}]   ;;  %s794_s6 = inlined_call_operand.vmem [shape: f32[1,64], index: 6, kind: input, shape index: {}]   ;;  %s795_s7 = inlined_call_operand.vmem [shape: bf16[64,8], index: 7, kind: input, shape index: {}]   ;;  %s796_s8 = inlined_call_operand.vmem [shape: f32[1,8], index: 8, kind: input, shape index: {}]   ;;  %s797_s9 = inlined_call_operand.hbm [shape: f32[8,8], index: 9, kind: output, shape index: {}]  }
   0x1   :  { %15 = vsyncpa [#allocation4], 0  ;;  %s26_s11 = sshll.u32 %s791_s3, 4  ;;  %s653_s12 = smov [#allocation2]   ;;  %s27_s11 = int_to_ptr.hbm [resolvable:$true] %s26_s11 }
   0x2   :  { %s28_s13 = sshll.u32 %s653_s12, 4  ;;  %s654_s14 = smov 64   ;;  %s29_s13 = int_to_ptr.vmem [resolvable:$true] %s28_s13 }
   0x3   :  { %s655_s15 = smov 4  }
   0x4   :  { %34 = dma.hbm_to_vmem [thread:$0]  %s27_s11, 2048, %s29_s13, [#allocation3], %s654_s14, %s654_s14, %s655_s15  }
   0x5   :  { %649 = dma.done.wait [#allocation3], 2048  }
   0x6   :  { %650 = vsyncadd [#allocation3], 4294965248  ;;  %v441_v0 = vld [vmem:[%s789_s1 + $0x10] sm:$0xf]  ;;  %v565_v1 = vld [vmem:[%s789_s1 + $0x14] sm:$0xf0] }
   0x7   :  { %v564_v2 = vld [vmem:[%s789_s1 + $0x14] sm:$0xf]  ;;  %v442_v3 = vor.u32 %v565_v1, %v441_v0  ;;  %v443_v4 = vld [vmem:[%s789_s1 + $0x18] sm:$0xf0]  ;;  %v433_v5 = vld [vmem:[%s789_s1] sm:$0xf] }
   0x8   :  { %v563_v6 = vld [vmem:[%s789_s1 + $0x4] sm:$0xf0]  ;;  %v446_v7 = vor.u32 %v564_v2, %v443_v4  ;;  %v562_v8 = vld [vmem:[%s789_s1 + $0x4] sm:$0xf]  ;;  %v435_v9 = vld [vmem:[%s789_s1 + $0x8] sm:$0xf0] }
   0x9   :  { %92 = vmatpush.bf16.msra.mxu0 %v442_v3  ;;  %v434_v10 = vor.u32 %v563_v6, %v433_v5  ;;  %v50_v11 = vld [vmem:[%s788_s0] sm:$0xff]  ;;  %v573_v12 = vld [vmem:[#allocation2 + $0x38] sm:$0xff]  ;;  %v438_v14 = vor.u32 %v562_v8, %v435_v9  ;;  %v572_v15 = vld [vmem:[#allocation2 + $0x30] sm:$0xff]  ;;  %vm82_vm0 = vcmask 261120   ;;  %vm395_vm1 = vcmask 523264   ;;  %s656_s15 = smov [#allocation5]  }
   0xa   :  { %v581_v13 = vld [vmem:[#allocation2 + $0x78] sm:$0xff]  ;;  %105 = vmatpush.bf16.msra.mxu1 %v446_v7  ;;  %248 = vmatpush.bf16.msra.mxu2 %v573_v12  ;;  %v580_v16 = vld [vmem:[#allocation2 + $0x70] sm:$0xff]  ;;  %v51_v17 = vpack.c.bf16 %v50_v11, %v50_v11  ;;  %v571_v18 = vld [vmem:[#allocation2 + $0x28] sm:$0xff]  ;;  %s419_s16 = sshll.u32 %s656_s15, 4  ;;  %s421_s18 = sshll.u32 %s797_s9, 4  ;;  %vm412_vm2 = vcmask 64512   ;;  %s420_s16 = int_to_ptr.vmem [resolvable:$true] %s419_s16  ;;  %s422_s18 = int_to_ptr.hbm [resolvable:$true] %s421_s18 }
   0xb   :  { %261 = vmatpush.bf16.msra.mxu3 %v581_v13  ;;  %v579_v19 = vld [vmem:[#allocation2 + $0x68] sm:$0xff]  ;;  %v570_v20 = vld [vmem:[#allocation2 + $0x20] sm:$0xff]  ;;  %v569_v22 = vld [vmem:[#allocation2 + $0x18] sm:$0xff] }
   0xc   :  { %v578_v21 = vld [vmem:[#allocation2 + $0x60] sm:$0xff]  ;;  %v577_v23 = vld [vmem:[#allocation2 + $0x58] sm:$0xff]  ;;  %v568_v24 = vld [vmem:[#allocation2 + $0x10] sm:$0xff] }
   0xd   :  { %93 = vmatpush.bf16.msra.mxu0 %v434_v10  ;;  %v576_v25 = vld [vmem:[#allocation2 + $0x50] sm:$0xff]  ;;  %v567_v26 = vld [vmem:[#allocation2 + $0x8] sm:$0xff]  ;;  %v566_v28 = vld [vmem:[#allocation2] sm:$0xff] }
   0xe   :  { %106 = vmatpush.bf16.msra.mxu1 %v438_v14  ;;  %249 = vmatpush.bf16.msra.mxu2 %v572_v15  ;;  %v575_v27 = vld [vmem:[#allocation2 + $0x48] sm:$0xff]  ;;  %v574_v29 = vld [vmem:[#allocation2 + $0x40] sm:$0xff]  ;;  %v589_v30 = vld [vmem:[%s793_s5 + $0x38] sm:$0xff] }
   0xf   :  { %262 = vmatpush.bf16.msra.mxu3 %v580_v16  ;;  %v588_v31 = vld [vmem:[%s793_s5 + $0x30] sm:$0xff]  ;;  %v587_v32 = vld [vmem:[%s793_s5 + $0x28] sm:$0xff]  ;;  %v586_v33 = vld [vmem:[%s793_s5 + $0x20] sm:$0xff] }
  0x10   :  { %447 = vmatmul.msk.bf16.vlgmr.msra.gmra.mxu0 %vm82_vm0, %v51_v17  ;;  %v585_v34 = vld [vmem:[%s793_s5 + $0x18] sm:$0xff]  ;;  %v56_v35 = vld [vmem:[%s790_s2] sm:$0x3]  ;;  %v584_v36 = vld [vmem:[%s793_s5 + $0x10] sm:$0xff] }
  0x11   :  { %448 = vmatmul.msk.bf16.vlgmr.msra.gmra.mxu1 %vm82_vm0, %v51_v17  ;;  %344 = vmatpush.bf16.msrb.mxu0 %v589_v30  ;;  %v58_v37 = vperm.slane %v56_v35, 0  ;;  %v59_v38 = vperm.slane %v56_v35, 1  ;;  %v583_v49 = vld [vmem:[%s793_s5 + $0x8] sm:$0xff]  ;;  %v582_v50 = vld [vmem:[%s793_s5] sm:$0xff]  ;;  %v593_v51 = vld [vmem:[%s795_s7 + $0x18] sm:$0xff] }
  0x12   :  { %250 = vmatpush.bf16.msra.mxu2 %v571_v18  ;;  %403 = vmatpush.bf16.msrb.mxu1 %v593_v51  ;;  %v592_v52 = vld [vmem:[%s795_s7 + $0x10] sm:$0xff]  ;;  %v591_v53 = vld [vmem:[%s795_s7 + $0x8] sm:$0xff]  ;;  %v598_v54 = vld [vmem:[%s792_s4] ss:$0 sm:$0xff] }
  0x13   :  { %263 = vmatpush.bf16.msra.mxu3 %v579_v19  ;;  %v590_v63 = vld [vmem:[%s795_s7] sm:$0xff] }
  0x14   :  { %v599_v0 = vld [vmem:[%s794_s6] ss:$0 sm:$0xff] }
  0x15   :  { %345 = vmatpush.bf16.msrb.mxu0 %v588_v31  ;;  %v600_v6 = vld [vmem:[%s796_s8] ss:$0 sm:$0xff] }
  0x16   :  { %251 = vmatpush.bf16.msra.mxu2 %v570_v20  ;;  %404 = vmatpush.bf16.msrb.mxu1 %v592_v52 }
  0x17   :  { %264 = vmatpush.bf16.msra.mxu3 %v578_v21 }
  0x19   :  { %346 = vmatpush.bf16.msrb.mxu0 %v587_v32 }
  0x1a   :  { %252 = vmatpush.bf16.msra.mxu2 %v569_v22  ;;  %405 = vmatpush.bf16.msrb.mxu1 %v591_v53 }
  0x1b   :  { %265 = vmatpush.bf16.msra.mxu3 %v577_v23 }
  0x1d   :  { %347 = vmatpush.bf16.msrb.mxu0 %v586_v33 }
  0x1e   :  { %253 = vmatpush.bf16.msra.mxu2 %v568_v24  ;;  %406 = vmatpush.bf16.msrb.mxu1 %v590_v63 }
  0x1f   :  { %266 = vmatpush.bf16.msra.mxu3 %v576_v25 }
  0x21   :  { %348 = vmatpush.bf16.msrb.mxu0 %v585_v34 }
  0x22   :  { %254 = vmatpush.bf16.msra.mxu2 %v567_v26 }
  0x23   :  { %267 = vmatpush.bf16.msra.mxu3 %v575_v27 }
  0x25   :  { %349 = vmatpush.bf16.msrb.mxu0 %v584_v36 }
  0x26   :  { %255 = vmatpush.bf16.msra.mxu2 %v566_v28 }
  0x27   :  { %268 = vmatpush.bf16.msra.mxu3 %v574_v29 }
  0x29   :  { %350 = vmatpush.bf16.msrb.mxu0 %v583_v49 }
  0x2d   :  { %351 = vmatpush.bf16.msrb.mxu0 %v582_v50 }
  0x8d   :  { %v95_v39 = vpop.f32.mrf.mxu0 }
  0x8e   :  { %v96_v40 = vadd.f32 %v95_v39, %v58_v37  ;;  %v108_v41 = vpop.f32.mrf.mxu1 }
  0x8f   :  { %v109_v42 = vadd.f32 %v108_v41, %v59_v38 }
  0x90   :  { %v112_v43 = vmax.f32 %v96_v40, 0.0 }
  0x91   :  { %v113_v44 = vmax.f32 %v109_v42, 0.0 }
  0x92   :  { %v114_v45 = vpack.c.bf16 %v112_v43, %v112_v43 }
  0x93   :  { %v115_v46 = vpack.c.bf16 %v113_v44, %v113_v44 }
  0x94   :  { %256 = vmatmul.bf16.vlgmr.msra.gmra.mxu2 %v114_v45 }
  0x95   :  { %269 = vmatmul.bf16.vlgmr.msra.gmra.mxu3 %v115_v46  ;;  %v97_v47 = vpop.f32.mrf.mxu0 }
  0x96   :  { %v110_v48 = vpop.f32.mrf.mxu1 }
 0x117   :  { %v257_v55 = vpop.f32.mrf.mxu2 }
 0x118   :  { %v258_v56 = vadd.f32 %v598_v54, %v257_v55  ;;  %v270_v57 = vpop.f32.mrf.mxu3 }
 0x11a   :  { %v271_v58 = vadd.f32 %v270_v57, %v258_v56 }
 0x11c   :  { %v274_v59 = vmax.f32 %v271_v58, 0.0 }
 0x11e   :  { %v275_v60 = vpack.c.bf16 %v274_v59, %v274_v59 }
 0x11f   :  { %v259_v61 = vpop.f32.mrf.mxu2 }
 0x120   :  { %v272_v62 = vpop.f32.mrf.mxu3  ;;  %352 = vmatmul.bf16.vlgmr.msrb.gmra.mxu0 %v275_v60 }
 0x19d   :  { %v353_v1 = vpop.f32.mrf.mxu0 }
 0x19e   :  { %v354_v2 = vadd.f32 %v599_v0, %v353_v1 }
 0x1a0   :  { %v357_v3 = vmax.f32 %v354_v2, 0.0 }
 0x1a2   :  { %v358_v4 = vpack.c.bf16 %v357_v3, %v357_v3 }
 0x1a4   :  { %561 = vmatmul.msk.bf16.vlgmr.msrb.gmra.mxu1 %vm395_vm1, %v358_v4 }
 0x1a5   :  { %v355_v5 = vpop.f32.mrf.mxu0 }
 0x221   :  { %v408_v7 = vpop.f32.mrf.mxu1 }
 0x222   :  { %v409_v8 = vadd.f32 %v600_v6, %v408_v7 }
 0x224   :  { %413 = vst.msk [vmem:[#allocation5] sm:$0xff] %vm412_vm2, %v409_v8 }
 0x225   :  { %424 = dma.vmem_to_hbm [thread:$0]  %s420_s16, 128, %s422_s18, [#allocation4]  }
 0x229   :  { %v410_v9 = vpop.f32.mrf.mxu1 }
 0x22a   :  { %651 = dma.done.wait [#allocation4], 128  }
 0x22b   :  { %652 = vsyncadd [#allocation4], 4294967168 }
 0x22c   :  { %429 = vsyncpa [#allocation3], 1 }
 0x22d   :  { %430 = vsyncpa [#allocation4], 1 }

</bundles_post_ra>
